<compile_context>
chip_gen: v6e
topology: v6e:2x2x1
jax: 0.10.0
libtpu: 0.0.40
codegen_flags: <defaults>
</compile_context>

<pallas_src>
import jax
import jax.numpy as jnp
from jax.experimental import pallas as pl
from jax.experimental.pallas import tpu as pltpu


def _round_up(x, m):
    return ((x + m - 1) // m) * m


def _tpu_vmem_capacity_bytes():
    """Physical VMEM per core (128 MiB v5e/v6e, 64 MiB v7x); safe fallback."""
    try:
        cap = int(getattr(pltpu.get_tpu_info(), "vmem_capacity_bytes", 0))
        if cap > 0:
            return max(cap, 64 << 20)
    except Exception:
        pass
    return 64 << 20


def _sigmoid(x):
    # Explicit sigmoid (exp runs on the EUP); avoids relying on lax.logistic.
    return 1.0 / (1.0 + jnp.exp(-x))


def _sim_row(e1, e2, d_pad):
    """Row-wise dot products, produced directly as a lane-dense (1, TB) row.

    ones(1, D) contracted with (e1 * e2) over the last dim of both operands
    runs on the MXU and emits the result in (1, TB) orientation, so the output
    store is a single unmasked lane-dense slab and no column->row relayout of
    a (TB, 1) reduction result is required.
    """
    ones_row = jnp.ones((1, d_pad), jnp.float32)
    return jax.lax.dot_general(
        ones_row, e1 * e2,
        dimension_numbers=(((1,), (1,)), ((), ())),
        preferred_element_type=jnp.float32)


# ---------------------------------------------------------------------------
# Path A: embedding table resident in VMEM (small / medium vocab).
# ---------------------------------------------------------------------------
def _make_resident_kernel(tb, d_pad, batch_size):
    def kernel(w1_ref, w2_ref, tbl_ref, o_ref, e1_buf, e2_buf):
        # w1_ref / w2_ref : SMEM scalar-prefetch refs, int32 [b_pad]
        # tbl_ref         : (v_pad, d_pad) VMEM-resident table (constant block)
        # o_ref           : (1, tb) lane-dense output block
        # e1_buf / e2_buf : (tb, d_pad) VMEM gather scratch
        base = pl.program_id(0) * tb
        # batch_size is a trace-time constant: skip gathers for padded rows of
        # the final tile.  Padded rows keep stale scratch contents; the wrapper
        # slices the output back to [:B], so their values never matter.
        n_valid = jnp.minimum(tb, batch_size - base)

        @pl.loop(0, n_valid)
        def _gather(j):
            r1 = w1_ref[base + j]
            r2 = w2_ref[base + j]
            e1_buf[pl.ds(j, 1), :] = tbl_ref[pl.ds(r1, 1), :]
            e2_buf[pl.ds(j, 1), :] = tbl_ref[pl.ds(r2, 1), :]
        # TODO(synk): unroll the gather loop 4-8x so SMEM index loads and the
        # VMEM row copies co-issue in the VLIW bundle.

        sim = _sim_row(e1_buf[...], e2_buf[...], d_pad)          # (1, tb)
        o_ref[...] = _sigmoid(sim).astype(o_ref.dtype)
    return kernel


# ---------------------------------------------------------------------------
# Path B: table stays in HBM; manual, double-buffered row-gather DMAs.
# ---------------------------------------------------------------------------
def _make_hbm_kernel(tb, d_pad):
    def kernel(w1_ref, w2_ref, emb_hbm, o_ref, ebuf, sem):
        # ebuf : (2, 2*tb, d_pad) VMEM; axis 0 = double-buffer slot,
        #        rows [0, tb) = word1 embeddings, rows [tb, 2*tb) = word2.
        # sem  : (2,) DMA semaphores, one per buffer slot.
        i = pl.program_id(0)
        nt = pl.num_programs(0)

        def issue(tile, slot):
            base = tile * tb

            @pl.loop(0, tb)
            def _issue(j):
                r1 = w1_ref[base + j]
                r2 = w2_ref[base + j]
                pltpu.make_async_copy(emb_hbm.at[pl.ds(r1, 1)],
                                      ebuf.at[slot, pl.ds(j, 1)],
                                      sem.at[slot]).start()
                pltpu.make_async_copy(emb_hbm.at[pl.ds(r2, 1)],
                                      ebuf.at[slot, pl.ds(tb + j, 1)],
                                      sem.at[slot]).start()
            # TODO(synk): unroll the issue loop 4-8x so SMEM index loads and
            # DMA-descriptor writes co-issue (gather is issue-rate bound).

        # Prime the pipeline with tile 0, then at every step prefetch tile i+1
        # into the other slot BEFORE consuming tile i, so the row-gather
        # latency of the next tile hides behind this tile's compute.
        @pl.when(i == 0)
        def _():
            issue(0, 0)

        @pl.when(i + 1 < nt)
        def _():
            issue(i + 1, (i + 1) % 2)

        slot = i % 2
        # ONE wait per tile: the DMA semaphore counts bytes, so a single
        # descriptor covering the whole slot (2*tb rows of d_pad f32) accounts
        # exactly for every row copy issued into it.  src/dst are same-shaped
        # VMEM views (dst is the real gather destination), so the byte count
        # matches irrespective of the vocab size.
        pltpu.make_async_copy(ebuf.at[1 - slot], ebuf.at[slot],
                              sem.at[slot]).wait()

        e1 = ebuf[slot, pl.ds(0, tb), :]
        e2 = ebuf[slot, pl.ds(tb, tb), :]
        sim = _sim_row(e1, e2, d_pad)                            # (1, tb)
        o_ref[...] = _sigmoid(sim).astype(o_ref.dtype)
    return kernel


# ---------------------------------------------------------------------------
# Wrapper
# ---------------------------------------------------------------------------
def word2vec_binary_forward(embeddings, word1, word2, *, max_tile_b=1024,
                            force_hbm_gather=False):
    """sigmoid(sum(emb[word1] * emb[word2], axis=-1)); emb [V,D], word* [B]."""
    V, D = embeddings.shape
    B = int(word1.shape[0])

    d_pad = _round_up(D, 128)      # lane alignment -> exact DMA byte accounting
    v_pad = _round_up(V, 8)        # sublane alignment for the resident table

    # Batch tile: multiple of 128 lanes (unmasked output stores); large default
    # to amortize the ~0.35us per-grid-step overhead (scratch stays small).
    tb = min(_round_up(B, 128), max(128, (max_tile_b // 128) * 128))
    b_pad = _round_up(B, tb)
    num_tiles = b_pad // tb

    emb = embeddings.astype(jnp.float32)
    if (v_pad, d_pad) != (V, D):   # zero padding never changes a dot product
        emb = jnp.pad(emb, ((0, v_pad - V), (0, d_pad - D)))

    # Clamp (an out-of-range word id must never drive an OOB load/DMA) and pad.
    w1 = jnp.clip(word1.astype(jnp.int32), 0, V - 1)
    w2 = jnp.clip(word2.astype(jnp.int32), 0, V - 1)
    if b_pad != B:
        w1 = jnp.pad(w1, (0, b_pad - B))
        w2 = jnp.pad(w2, (0, b_pad - B))

    vmem_cap = _tpu_vmem_capacity_bytes()
    table_bytes = v_pad * d_pad * 4
    # Resident path if (double-buffered) table + gather scratch fits in a
    # conservative quarter of physical VMEM (=> lower gate on v7x's 64 MiB).
    resident_bytes = 2 * table_bytes + 2 * tb * d_pad * 4
    use_resident = (not force_hbm_gather) and resident_bytes <= vmem_cap // 4

    if use_resident:
        needed = resident_bytes + 2 * 4 * b_pad
        grid_spec = pltpu.PrefetchScalarGridSpec(
            num_scalar_prefetch=2,                     # word1, word2 -> SMEM
            grid=(num_tiles,),
            in_specs=[
                # Table resident in VMEM for the whole grid (constant block).
                pl.BlockSpec((v_pad, d_pad), lambda i, _w1, _w2: (0, 0)),
            ],
            out_specs=pl.BlockSpec((1, tb), lambda i, _w1, _w2: (0, i)),
            scratch_shapes=[
                pltpu.VMEM((tb, d_pad), jnp.float32),
                pltpu.VMEM((tb, d_pad), jnp.float32),
            ],
        )
        kernel = _make_resident_kernel(tb, d_pad, B)
        # Output tiles are disjoint and there is no cross-step state, so the
        # grid axis can be split across TensorCores.
        semantics = ("parallel",)
    else:
        needed = 2 * (2 * tb) * d_pad * 4 + 2 * 4 * b_pad
        grid_spec = pltpu.PrefetchScalarGridSpec(
            num_scalar_prefetch=2,
            grid=(num_tiles,),
            in_specs=[pl.BlockSpec(memory_space=pl.ANY)],   # table stays in HBM
            out_specs=pl.BlockSpec((1, tb), lambda i, _w1, _w2: (0, i)),
            scratch_shapes=[
                pltpu.VMEM((2, 2 * tb, d_pad), jnp.float32),
                pltpu.SemaphoreType.DMA((2,)),
            ],
        )
        kernel = _make_hbm_kernel(tb, d_pad)
        # Cross-tile double buffering carries DMA state between grid steps, so
        # the grid must stay sequential on one core.
        semantics = ("arbitrary",)

    vmem_limit = int(min(max(needed + (16 << 20), 32 << 20),
                         (vmem_cap * 3) // 4))

    out = pl.pallas_call(
        kernel,
        out_shape=jax.ShapeDtypeStruct((1, b_pad), jnp.float32),
        grid_spec=grid_spec,
        compiler_params=pltpu.CompilerParams(
            dimension_semantics=semantics,
            vmem_limit_bytes=vmem_limit,
        ),
    )(w1, w2, emb)

    return out[0, :B]


def _reference_forward(embeddings, word1, word2):
    e1 = embeddings[word1]
    e2 = embeddings[word2]
    return jax.nn.sigmoid(jnp.sum(e1 * e2, axis=1))


if __name__ == "__main__":
    vocab_size = 64
    embedding_dim = 128
    batch = 8

    key = jax.random.PRNGKey(0)
    k_emb, k_w1, k_w2 = jax.random.split(key, 3)

    # Deterministic "nn.Embedding"-style weights (synthetic normal * 0.1).
    embeddings = (jax.random.normal(k_emb, (vocab_size, embedding_dim),
                                    dtype=jnp.float32) * 0.1)
    word1 = jax.random.randint(k_w1, (batch,), 0, vocab_size, dtype=jnp.int32)
    word2 = jax.random.randint(k_w2, (batch,), 0, vocab_size, dtype=jnp.int32)

    # Path A: VMEM-resident table (the natural path for this small vocab).
    out = word2vec_binary_forward(embeddings, word1, word2)
    out = jax.block_until_ready(out)
    ref = _reference_forward(embeddings, word1, word2)
    assert out.shape == (batch,)
    # 1e-3 tolerance: the MXU reduce may round f32 inputs to bf16 passes.
    assert jnp.allclose(out, ref, atol=1e-3, rtol=1e-3), (out, ref)

    # Path B: forced HBM-gather fallback, with a batch spanning two tiles so
    # the cross-tile double-buffered gather and single-wait logic is exercised.
    batch2 = 200
    k_w3, k_w4 = jax.random.split(k_w2)
    w1b = jax.random.randint(k_w3, (batch2,), 0, vocab_size, dtype=jnp.int32)
    w2b = jax.random.randint(k_w4, (batch2,), 0, vocab_size, dtype=jnp.int32)
    out_b = word2vec_binary_forward(embeddings, w1b, w2b,
                                    force_hbm_gather=True)
    out_b = jax.block_until_ready(out_b)
    ref_b = _reference_forward(embeddings, w1b, w2b)
    assert out_b.shape == (batch2,)
    assert jnp.allclose(out_b, ref_b, atol=1e-3, rtol=1e-3), (out_b, ref_b)

    print("KERNEL_OK")
</pallas_src>

<mosaic_0001>
module attributes {stable_mosaic.version = 11 : i64} {
  func.func @kernel(%arg0: i32, %arg1: memref<128xi32, #tpu.memory_space<smem>>, %arg2: memref<128xi32, #tpu.memory_space<smem>>, %arg3: memref<64x128xf32, #tpu.memory_space<vmem>>, %arg4: memref<1x128xf32, #tpu.memory_space<vmem>>, %arg5: memref<128x128xf32, #tpu.memory_space<vmem>>, %arg6: memref<128x128xf32, #tpu.memory_space<vmem>>) attributes {dimension_semantics = [#tpu.dimension_semantics<parallel>], iteration_bounds = array<i64: 1>, scalar_prefetch = 2 : i64, scratch_operands = 2 : i64, tpu.core_type = #tpu.core_type<tc>, window_params = [{pipeline_mode = #tpu.pipeline_mode<synchronous>, transform_indices = @transform_0, window_bounds = array<i64: 64, 128>}, {transform_indices = @transform_1, window_bounds = array<i64: 1, 128>}]} {
    %c128_i32 = arith.constant 128 : i32
    %0 = arith.muli %arg0, %c128_i32 : i32
    %c8_i32 = arith.constant 8 : i32
    %1 = arith.subi %c8_i32, %0 : i32
    %c128_i32_0 = arith.constant 128 : i32
    %2 = arith.minsi %c128_i32_0, %1 : i32
    %c0_i32 = arith.constant 0 : i32
    %3 = arith.subi %2, %c0_i32 : i32
    %c1_i32 = arith.constant 1 : i32
    %c1_i32_1 = arith.constant 1 : i32
    %4 = arith.subi %c1_i32, %c1_i32_1 : i32
    %5 = arith.addi %3, %4 : i32
    %c1_i32_2 = arith.constant 1 : i32
    %6 = arith.divsi %5, %c1_i32_2 : i32
    %c1_i32_3 = arith.constant 1 : i32
    %c0_i32_4 = arith.constant 0 : i32
    %c0_i32_5 = arith.constant 0 : i32
    %7 = arith.subi %6, %c0_i32_5 : i32
    %8 = arith.addi %c0_i32_5, %7 : i32
    %c1_i32_6 = arith.constant 1 : i32
    scf.for %arg7 = %c0_i32_5 to %8 step %c1_i32_6  : i32 {
      %22 = arith.muli %arg7, %c1_i32_3 : i32
      %23 = arith.addi %c0_i32_4, %22 : i32
      %24 = arith.addi %0, %23 : i32
      %25 = arith.index_cast %24 : i32 to index
      %26 = memref.load %arg1[%25] : memref<128xi32, #tpu.memory_space<smem>>
      %27 = arith.addi %0, %23 : i32
      %28 = arith.index_cast %27 : i32 to index
      %29 = memref.load %arg2[%28] : memref<128xi32, #tpu.memory_space<smem>>
      %30 = arith.index_cast %26 : i32 to index
      %c0_16 = arith.constant 0 : index
      %31 = vector.load %arg3[%30, %c0_16] : memref<64x128xf32, #tpu.memory_space<vmem>>, vector<1x128xf32>
      %32 = arith.index_cast %23 : i32 to index
      %c0_17 = arith.constant 0 : index
      %33 = vector.load %arg5[%32, %c0_17] : memref<128x128xf32, #tpu.memory_space<vmem>>, vector<1x128xf32>
      tpu.vector_store %arg5[%32, %c0_17], %31 {strides = array<i32>} : memref<128x128xf32, #tpu.memory_space<vmem>>, vector<1x128xf32>,
      %34 = arith.index_cast %29 : i32 to index
      %c0_18 = arith.constant 0 : index
      %35 = vector.load %arg3[%34, %c0_18] : memref<64x128xf32, #tpu.memory_space<vmem>>, vector<1x128xf32>
      %36 = arith.index_cast %23 : i32 to index
      %c0_19 = arith.constant 0 : index
      %37 = vector.load %arg6[%36, %c0_19] : memref<128x128xf32, #tpu.memory_space<vmem>>, vector<1x128xf32>
      tpu.vector_store %arg6[%36, %c0_19], %35 {strides = array<i32>} : memref<128x128xf32, #tpu.memory_space<vmem>>, vector<1x128xf32>,
    }
    %c0 = arith.constant 0 : index
    %c0_7 = arith.constant 0 : index
    %9 = vector.load %arg5[%c0, %c0_7] : memref<128x128xf32, #tpu.memory_space<vmem>>, vector<128x128xf32>
    %c0_8 = arith.constant 0 : index
    %c0_9 = arith.constant 0 : index
    %10 = vector.load %arg6[%c0_8, %c0_9] : memref<128x128xf32, #tpu.memory_space<vmem>>, vector<128x128xf32>
    %cst = arith.constant 1.000000e+00 : f32
    %11 = vector.broadcast %cst : f32 to vector<1x128xf32>
    %12 = arith.mulf %9, %10 : vector<128x128xf32>
    %cst_10 = arith.constant dense<0.000000e+00> : vector<1x128xf32>
    %13 = tpu.matmul %11, %12, %cst_10 {dimension_numbers = #tpu.dot_dimension_numbers<[1], [1], [0], [0], [0, 0, 1, 0], [], []>} : vector<1x128xf32>, vector<128x128xf32>, vector<1x128xf32> -> vector<1x128xf32>
    %cst_11 = arith.constant 0.000000e+00 : f32
    %14 = vector.broadcast %cst_11 : f32 to vector<1x128xf32>
    %15 = arith.subf %14, %13 : vector<1x128xf32>
    %16 = math.exp %15 : vector<1x128xf32>
    %cst_12 = arith.constant 1.000000e+00 : f32
    %17 = vector.broadcast %cst_12 : f32 to vector<1x128xf32>
    %18 = arith.addf %17, %16 : vector<1x128xf32>
    %cst_13 = arith.constant 1.000000e+00 : f32
    %19 = vector.broadcast %cst_13 : f32 to vector<1x128xf32>
    %20 = arith.divf %19, %18 : vector<1x128xf32>
    %c0_14 = arith.constant 0 : index
    %c0_15 = arith.constant 0 : index
    %21 = vector.load %arg4[%c0_14, %c0_15] : memref<1x128xf32, #tpu.memory_space<vmem>>, vector<1x128xf32>
    tpu.vector_store %arg4[%c0_14, %c0_15], %20 {strides = array<i32>} : memref<1x128xf32, #tpu.memory_space<vmem>>, vector<1x128xf32>,
    return
  }
  func.func @transform_0(%arg0: i32, %arg1: memref<128xi32, #tpu.memory_space<smem>>, %arg2: memref<128xi32, #tpu.memory_space<smem>>) -> (i32, i32) {
    %c0_i32 = arith.constant 0 : i32
    %c0_i32_0 = arith.constant 0 : i32
    %c0_i32_1 = arith.constant 0 : i32
    return %c0_i32, %c0_i32_0 : i32, i32
  }
  func.func @transform_1(%arg0: i32, %arg1: memref<128xi32, #tpu.memory_space<smem>>, %arg2: memref<128xi32, #tpu.memory_space<smem>>) -> (i32, i32) {
    %c0_i32 = arith.constant 0 : i32
    %c0_i32_0 = arith.constant 0 : i32
    return %c0_i32, %arg0 : i32, i32
  }
}

</mosaic_0001>

<bundles_post_ra>
// kernel: tpu_custom_call.1
= control target key start
LH: loop header
LB: loop body
LE: loop exit
PB: predicated region body
PF: predicated region fallthrough
CT: control target
= control target key end

     0   :  { %s350_s12 = smov [#allocation5]   ;;  %s408_s0 = inlined_call_operand.hbm [shape: s32[128], index: 0, kind: input, shape index: {}]   ;;  %s409_s2 = inlined_call_operand.hbm [shape: f32[64,128], index: 2, kind: input, shape index: {}]   ;;  %s410_s3 = inlined_call_operand.hbm [shape: f32[1,128], index: 3, kind: output, shape index: {}]   ;;  %s411_s1 = inlined_call_operand.vmem [shape: s32[128], index: 1, kind: input, shape index: {}]  }
   0x1   :  { %9 = dma.hbm_to_smem %s408_s0, 16, %s350_s12, [#allocation4] }
   0x2   :  { %s10_s17 = sshll.u32 %s411_s1, 4  ;;  %s11_s17 = int_to_ptr.vmem [resolvable:$true] %s10_s17 }
   0x3   :  { %s284_s18 = scalar_lea.vmem %s11_s17, 16  ;;  %p289_p1 = scmp.lt.s32.totalorder %s11_s17, %s11_s17 }
   0x4   :  { %p285_p0 = scmp.ne.s32.totalorder %s11_s17, %s284_s18  ;;  %p290_p2 = scmp.lt.s32.totalorder %s284_s18, %s284_s18 }
   0x6   :  { %p291_p3 = por %p290_p2, %p289_p1 }
   0x8   :  { %p292_p4 = pnand %p291_p3, %p285_p0 }
   0xa   :  { %295 = shalt.err (!%p292_p4)  }
   0xb   :  { %s351_s19 = smov [#allocation6]  }
   0xc   :  { %13 = dma.vmem_to_smem %s11_s17, 16, %s351_s19, [#allocation4] }
   0xd   :  { %340 = dma.done.wait [#allocation4], 32 }
   0xe   :  { %341 = vsyncadd [#allocation4], 4294967264 }
   0xf   :  { %15 = sfence }
  0x10   :  { %16 = vsyncpa [#allocation8], 0 }
  0x11   :  { %17 = vsyncpa [#allocation9], 0  ;;  %s352_s0 = smov [#allocation7]  }
  0x12   :  { %s23_s20 = sshll.u32 %s352_s0, 4  ;;  %s24_s20 = int_to_ptr.vmem [resolvable:$true] %s23_s20 }
  0x13   :  { %s304_s21 = scalar_lea.vmem %s24_s20, 1024  ;;  %p309_p6 = scmp.lt.s32.totalorder %s24_s20, %s24_s20 }
  0x14   :  { %p305_p5 = scmp.ne.s32.totalorder %s24_s20, %s304_s21  ;;  %p310_p7 = scmp.lt.s32.totalorder %s304_s21, %s304_s21 }
  0x16   :  { %p311_p8 = por %p310_p7, %p309_p6 }
  0x18   :  { %p312_p9 = pnand %p311_p8, %p305_p5 }
  0x1a   :  { %315 = shalt.err (!%p312_p9)
}
  0x1b   :  { %s353_s1 = smov 128   ;;  %s354_s22 = smov 8  }
  0x1c   :  { %29 = dma.hbm_to_vmem [thread:$0]  %s409_s2, 1024, %s24_s20, [#allocation8], %s353_s1, %s353_s1, %s354_s22  }
  0x1d   :  { %342 = dma.done.wait [#allocation8], 1024  }
  0x1e   :  { %343 = vsyncadd [#allocation8], 4294966272  ;;  %s346_s25 = smov 0  }
  0x1f LB: > { %s44_s26 = sld [smem:[#allocation5 + %s348_s25]]  ;;  %s48_s29 = scalar_lea.vmem [#allocation2], %s348_s25  ;;  %s348_s25 = sphi %s346_s25, %s40_s25  }
  0x20   : > { %s45_s27 = sld [smem:[#allocation6 + %s348_s25]]  ;;  %s52_s4 = scalar_lea.vmem [#allocation3], %s348_s25 }
  0x21   : > { %s40_s25 = sadd.s32 1, %s348_s25  }
  0x22   : > { %p39_p10 = scmp.ge.s32.totalorder %s40_s25, 8 }
  0x23   :  { %v355_v5 = vmov (%p39_p10), 0.0   ;;  %vm356_vm0 = vmmov (%p39_p10), 0   ;;  %v357_v51 = vmov (%p39_p10), 1.0   ;;  %s358_s2 = smov (%p39_p10), [#allocation10]  }
  0x24   :  { %42 = sbr.rel (!%p39_p10) target bundleno = 31 (0x1f), region = 39  ;;  %220 = vmatprep.subr.mxu0 (%p39_p10), %v355_v5  ;;  %252 = vmatprep.mubr.msk.f32.mxu0 (%p39_p10), %vm356_vm0, %v355_v5  ;;  %s185_s5 = sshll.u32 (%p39_p10), %s358_s2, 4  ;;  %s186_s5 = int_to_ptr.vmem [resolvable:$true] %s185_s5 }
  0x25   : > { %s46_s28 = scalar_lea.vmem [#allocation7], %s44_s26  ;;  %s316_s6 = scalar_lea.vmem (%p39_p10), %s186_s5, 16 }
  0x26   : > { %v47_v0 = vld [vmem:[%s46_s28] sm:$0x1]  ;;  %s50_s30 = scalar_lea.vmem [#allocation7], %s45_s27  ;;  %p317_p11 = scmp.ne.s32.totalorder (%p39_p10), %s186_s5, %s316_s6 }
  0x27   : > { %49 = vst [vmem:[%s48_s29] sm:$0x1] %v47_v0  ;;  %v51_v1 = vld [vmem:[%s50_s30] sm:$0x1]  ;;  %s320_s7 = scalar_lea.vmem (%p39_p10), %s186_s5, 32  ;;  %p321_p12 = scmp.lt.s32.totalorder (%p39_p10), %s186_s5, %s186_s5 }
  0x28   : > { %53 = vst [vmem:[%s52_s4] sm:$0x1] %v51_v1  ;;  %p322_p13 = scmp.lt.s32.totalorder (%p39_p10), %s320_s7, %s316_s6 }
  0x2a   :  { %p323_p0 = por %p322_p13, %p321_p12 }
  0x2c   :  { %p324_p1 = pnand %p323_p0, %p317_p11 }
  0x2e   :  { %v69_v2 = vld [vmem:[#allocation2 + $0x78] sm:$0xff]  ;;  %v68_v4 = vld [vmem:[#allocation2 + $0x70] sm:$0xff]  ;;  %v67_v9 = vld [vmem:[#allocation2 + $0x68] sm:$0xff] }
  0x2f   :  { %v85_v3 = vld [vmem:[#allocation3 + $0x78] sm:$0xff]  ;;  %v84_v7 = vld [vmem:[#allocation3 + $0x70] sm:$0xff]  ;;  %v83_v10 = vld [vmem:[#allocation3 + $0x68] sm:$0xff] }
  0x30   :  { %v101_v6 = vmul.f32 %v85_v3, %v69_v2  ;;  %v100_v8 = vmul.f32 %v84_v7, %v68_v4  ;;  %v99_v11 = vmul.f32 %v83_v10, %v67_v9  ;;  %v66_v12 = vld [vmem:[#allocation2 + $0x60] sm:$0xff]  ;;  %v65_v15 = vld [vmem:[#allocation2 + $0x58] sm:$0xff]  ;;  %v64_v18 = vld [vmem:[#allocation2 + $0x50] sm:$0xff] }
  0x31   :  { %v82_v13 = vld [vmem:[#allocation3 + $0x60] sm:$0xff]  ;;  %v81_v16 = vld [vmem:[#allocation3 + $0x58] sm:$0xff]  ;;  %v80_v19 = vld [vmem:[#allocation3 + $0x50] sm:$0xff] }
  0x32   :  { %221 = vmatpush3.xpose.msra.mxu0 %v101_v6  ;;  %v98_v14 = vmul.f32 %v82_v13, %v66_v12  ;;  %v97_v17 = vmul.f32 %v81_v16, %v65_v15  ;;  %v96_v20 = vmul.f32 %v80_v19, %v64_v18  ;;  %v63_v21 = vld [vmem:[#allocation2 + $0x48] sm:$0xff]  ;;  %v62_v24 = vld [vmem:[#allocation2 + $0x40] sm:$0xff]  ;;  %v61_v27 = vld [vmem:[#allocation2 + $0x38] sm:$0xff] }
  0x33   :  { %222 = vmatprep.subr.mxu0 %v355_v5  ;;  %v79_v22 = vld [vmem:[#allocation3 + $0x48] sm:$0xff]  ;;  %v78_v25 = vld [vmem:[#allocation3 + $0x40] sm:$0xff]  ;;  %v77_v28 = vld [vmem:[#allocation3 + $0x38] sm:$0xff] }
  0x34   :  { %v95_v23 = vmul.f32 %v79_v22, %v63_v21  ;;  %v94_v26 = vmul.f32 %v78_v25, %v62_v24  ;;  %v93_v29 = vmul.f32 %v77_v28, %v61_v27  ;;  %v60_v30 = vld [vmem:[#allocation2 + $0x30] sm:$0xff]  ;;  %v59_v33 = vld [vmem:[#allocation2 + $0x28] sm:$0xff]  ;;  %v58_v36 = vld [vmem:[#allocation2 + $0x20] sm:$0xff] }
  0x35   :  { %v76_v31 = vld [vmem:[#allocation3 + $0x30] sm:$0xff]  ;;  %v75_v34 = vld [vmem:[#allocation3 + $0x28] sm:$0xff]  ;;  %v74_v37 = vld [vmem:[#allocation3 + $0x20] sm:$0xff] }
  0x36   :  { %223 = vmatpush3.xpose.msra.mxu0 %v100_v8  ;;  %v92_v32 = vmul.f32 %v76_v31, %v60_v30  ;;  %v91_v35 = vmul.f32 %v75_v34, %v59_v33  ;;  %v90_v38 = vmul.f32 %v74_v37, %v58_v36  ;;  %v57_v39 = vld [vmem:[#allocation2 + $0x18] sm:$0xff]  ;;  %v56_v42 = vld [vmem:[#allocation2 + $0x10] sm:$0xff]  ;;  %v55_v45 = vld [vmem:[#allocation2 + $0x8] sm:$0xff] }
  0x37   :  { %224 = vmatprep.subr.mxu0 %v355_v5  ;;  %v73_v40 = vld [vmem:[#allocation3 + $0x18] sm:$0xff]  ;;  %v72_v43 = vld [vmem:[#allocation3 + $0x10] sm:$0xff]  ;;  %v71_v46 = vld [vmem:[#allocation3 + $0x8] sm:$0xff] }
  0x38   :  { %v89_v41 = vmul.f32 %v73_v40, %v57_v39  ;;  %v88_v44 = vmul.f32 %v72_v43, %v56_v42  ;;  %v87_v47 = vmul.f32 %v71_v46, %v55_v45  ;;  %v54_v48 = vld [vmem:[#allocation2] sm:$0xff] }
  0x39   :  { %v70_v49 = vld [vmem:[#allocation3] sm:$0xff] }
  0x3a   :  { %225 = vmatpush3.xpose.msra.mxu0 %v99_v11  ;;  %v86_v50 = vmul.f32 %v70_v49, %v54_v48 }
  0x3b   :  { %226 = vmatprep.subr.mxu0 %v355_v5 }
  0x3e   :  { %227 = vmatpush3.xpose.msra.mxu0 %v98_v14 }
  0x3f   :  { %228 = vmatprep.subr.mxu0 %v355_v5 }
  0x42   :  { %229 = vmatpush3.xpose.msra.mxu0 %v97_v17 }
  0x43   :  { %230 = vmatprep.subr.mxu0 %v355_v5 }
  0x46   :  { %231 = vmatpush3.xpose.msra.mxu0 %v96_v20 }
  0x47   :  { %232 = vmatprep.subr.mxu0 %v355_v5 }
  0x4a   :  { %233 = vmatpush3.xpose.msra.mxu0 %v95_v23 }
  0x4b   :  { %234 = vmatprep.subr.mxu0 %v355_v5 }
  0x4e   :  { %235 = vmatpush3.xpose.msra.mxu0 %v94_v26 }
  0x4f   :  { %236 = vmatprep.subr.mxu0 %v355_v5 }
  0x52   :  { %237 = vmatpush3.xpose.msra.mxu0 %v93_v29 }
  0x53   :  { %238 = vmatprep.subr.mxu0 %v355_v5 }
  0x56   :  { %239 = vmatpush3.xpose.msra.mxu0 %v92_v32 }
  0x57   :  { %240 = vmatprep.subr.mxu0 %v355_v5 }
  0x5a   :  { %241 = vmatpush3.xpose.msra.mxu0 %v91_v35 }
  0x5b   :  { %242 = vmatprep.subr.mxu0 %v355_v5 }
  0x5e   :  { %243 = vmatpush3.xpose.msra.mxu0 %v90_v38 }
  0x5f   :  { %244 = vmatprep.subr.mxu0 %v355_v5 }
  0x62   :  { %245 = vmatpush3.xpose.msra.mxu0 %v89_v41 }
  0x63   :  { %246 = vmatprep.subr.mxu0 %v355_v5 }
  0x66   :  { %247 = vmatpush3.xpose.msra.mxu0 %v88_v44 }
  0x67   :  { %248 = vmatprep.subr.mxu0 %v355_v5 }
  0x6a   :  { %249 = vmatpush3.xpose.msra.mxu0 %v87_v47 }
  0x6b   :  { %250 = vmatprep.subr.mxu0 %v355_v5 }
  0x6e   :  { %251 = vmatpush3.xpose.msra.mxu0 %v86_v50 }
  0x71   :  { %253 = vmatmul.mubr.f32.vlgmr.msra.gmra.mxu0 %v357_v51 }
 0x131   :  { %v168_v52 = vpop.f32.mrf.mxu0 }
 0x132   :  { %v172_v53 = vsub.f32 0.0, %v168_v52 }
 0x133   :  { %v254_v54 = vpop.f32.mrf.mxu0 }
 0x134   :  { %v173_v55 = vmul.f32 1.442695, %v172_v53 }
 0x136   :  { %272 = vpow2.f32 %v173_v55 }
 0x143   :  { %v273_v56 = vpop.eup %272 }
 0x144   :  { %v175_v57 = vadd.f32 1.0, %v273_v56 }
 0x146   :  { %274 = vrcp.f32 %v175_v57 }
 0x153   :  { %v275_v58 = vpop.eup %274 }
 0x154   :  { %178 = vst [vmem:[#allocation10] sm:$0x1] %v275_v58 }
 0x155   :  { %327 = shalt.err (!%p324_p1)
}
 0x156   :  { %188 = dma.vmem_to_hbm [thread:$0]  %s186_s5, 16, %s410_s3, [#allocation9]  }
 0x157   :  { %344 = dma.done.wait [#allocation9], 16  }
 0x158   :  { %345 = vsyncadd [#allocation9], 4294967280 }
 0x159   :  { %192 = vsyncpa [#allocation8], 1 }
 0x15a   :  { %193 = vsyncpa [#allocation9], 1 }

</bundles_post_ra>
